<compile_context>
chip_gen: v6e
topology: v6e:2x2x1
jax: 0.10.0
libtpu: 0.0.40
codegen_flags: <defaults>
</compile_context>

<pallas_src>
import functools

import jax
import jax.numpy as jnp
from jax.experimental import pallas as pl
from jax.experimental.pallas import tpu as pltpu


def _round_up(x, m):
    return ((x + m - 1) // m) * m


# ----------------------------------------------------------------------------
# Kernel
# ----------------------------------------------------------------------------
def _critic_kernel(sa_ref, w1_ref, b12_ref, w2_ref, w3_ref, out_ref, *,
                   hh, split):
    """One batch tile of the fused twin-Q critic.

    sa : (blk, in_dim)           bf16  streamed
    w1 : (in_dim, Hp)            bf16  resident (l1 | l4 fused along lanes)
    b12: (2, Hp)                 f32   resident (row0 = layer-1 bias, row1 = layer-2 bias)
    w2 : (Hp, Hp) block-diag     bf16  resident              (split=False, 2*H <= 128)
         (2, Hh, Hh) stacked     bf16  resident              (split=True)
    w3 : (Hp, 2)                 bf16  resident (col0 = q1 head, col1 = q2 head)
    out: (blk, 2)                f32
    """
    cdt = w1_ref.dtype

    # Layer 1 (l1 & l4 fused): relu(sa @ W1 + b1)
    h = jnp.dot(sa_ref[...], w1_ref[...], preferred_element_type=jnp.float32)
    h = jnp.maximum(h + b12_ref[0:1, :], 0.0).astype(cdt)

    if split:
        # Layer 2: two (Hh,Hh) dots on 128-aligned lane slices (no zero-block FLOPs).
        g1 = jnp.dot(h[:, :hh], w2_ref[0], preferred_element_type=jnp.float32)
        g2 = jnp.dot(h[:, hh:], w2_ref[1], preferred_element_type=jnp.float32)
        g1 = jnp.maximum(g1 + b12_ref[1:2, :hh], 0.0).astype(cdt)
        g2 = jnp.maximum(g2 + b12_ref[1:2, hh:], 0.0).astype(cdt)
        # Layer 3 (l3 | l6): per-head contribution to the (blk, 2) output.
        q = (jnp.dot(g1, w3_ref[:hh, :], preferred_element_type=jnp.float32)
             + jnp.dot(g2, w3_ref[hh:, :], preferred_element_type=jnp.float32))
    else:
        # Layer 2: single block-diagonal dot (Hp = 128, same cost either way).
        g = jnp.dot(h, w2_ref[...], preferred_element_type=jnp.float32)
        g = jnp.maximum(g + b12_ref[1:2, :], 0.0).astype(cdt)
        q = jnp.dot(g, w3_ref[...], preferred_element_type=jnp.float32)

    out_ref[...] = q.astype(out_ref.dtype)


# ----------------------------------------------------------------------------
# Host-side weight packing (run ONCE, not per call)
# ----------------------------------------------------------------------------
def pack_critic_params(params, state_dim, action_dim, hidden_width, *,
                       lane=128, dtype=jnp.bfloat16):
    """Fuse the two Q heads into packed weights. Zero padding is exact
    (relu(0)=0 and zero weight blocks => no cross-talk between heads)."""
    H = hidden_width
    in_dim = state_dim + action_dim
    split = 2 * H > lane
    if split:
        hh = _round_up(H, lane)      # per-head padded hidden width
        Hp = 2 * hh
        off = hh                     # lane offset of head 2
    else:
        hh = lane
        Hp = lane
        off = H

    w1f = jnp.zeros((in_dim, Hp), jnp.float32)
    w1f = w1f.at[:, :H].set(params["w1"]).at[:, off:off + H].set(params["w4"])

    b12 = jnp.zeros((2, Hp), jnp.float32)
    b12 = (b12.at[0:1, :H].set(params["b1"])
              .at[0:1, off:off + H].set(params["b4"])
              .at[1:2, :H].set(params["b2"])
              .at[1:2, off:off + H].set(params["b5"]))

    if split:
        w2p = jnp.zeros((2, hh, hh), jnp.float32)
        w2p = w2p.at[0, :H, :H].set(params["w2"]).at[1, :H, :H].set(params["w5"])
    else:
        w2p = jnp.zeros((Hp, Hp), jnp.float32)
        w2p = (w2p.at[:H, :H].set(params["w2"])
                  .at[off:off + H, off:off + H].set(params["w5"]))

    w3f = jnp.zeros((Hp, 2), jnp.float32)
    w3f = w3f.at[:H, 0:1].set(params["w3"]).at[off:off + H, 1:2].set(params["w6"])

    b3 = jnp.concatenate([params["b3"], params["b6"]], axis=1)  # (1, 2)

    return {
        "w1": w1f.astype(dtype),   # (in_dim, Hp)  bf16
        "b12": b12,                # (2, Hp)       f32 (tiny; added to f32 acc)
        "w2": w2p.astype(dtype),   # (Hp,Hp) or (2,Hh,Hh)  bf16
        "w3": w3f.astype(dtype),   # (Hp, 2)       bf16
        "b3": b3,                  # (1, 2)        f32, added in the wrapper
    }


# ----------------------------------------------------------------------------
# Batch tiling
# ----------------------------------------------------------------------------
def _pick_tile(batch, max_block):
    bp = _round_up(batch, 8)
    blk = min(max_block, bp)
    # Keep >=2 grid steps on larger batches so v7x's second TensorCore gets
    # work, while keeping tiles big enough to amortize per-step overhead.
    if bp > 128 and bp // blk < 2:
        blk = _round_up((bp + 1) // 2, 8)
    bp = _round_up(bp, blk)
    return blk, bp


# ----------------------------------------------------------------------------
# Forward wrapper
# ----------------------------------------------------------------------------
@functools.partial(jax.jit, static_argnames=("block_b",))
def critic_forward(s, a, packed, block_b=512):
    """Computes (q1, q2) exactly like Critic.forward(s, a)."""
    B, state_dim = s.shape
    action_dim = a.shape[1]
    in_dim = state_dim + action_dim

    w1, b12, w2, w3 = packed["w1"], packed["b12"], packed["w2"], packed["w3"]
    Hp = w1.shape[1]
    split = w2.ndim == 3
    hh = w2.shape[-1]

    # Single streamed operand: concat the features once, cast to bf16.
    sa = jnp.concatenate([s, a], axis=1).astype(w1.dtype)

    blk, Bp = _pick_tile(B, block_b)
    if Bp != B:
        sa = jnp.pad(sa, ((0, Bp - B), (0, 0)))
    grid = (Bp // blk,)

    def resident(arr):
        # Same block every grid step -> stays resident in VMEM.
        # TODO(synk): for very large hidden widths on v7x (64 MiB VMEM), single-
        # buffer these specs (pipeline_mode=pl.Buffered(1)) to halve residency.
        nd = arr.ndim
        return pl.BlockSpec(arr.shape, lambda i: (0,) * nd)

    itemsize = jnp.dtype(w1.dtype).itemsize
    w_bytes = sum(int(x.size) * jnp.dtype(x.dtype).itemsize
                  for x in (w1, b12, w2, w3))
    macs = Bp * (in_dim * Hp + (2 * hh * hh if split else Hp * Hp) + 2 * Hp)
    cost = pl.CostEstimate(
        flops=2 * macs,
        transcendentals=0,
        bytes_accessed=int(Bp * in_dim * itemsize + Bp * 2 * 4 + w_bytes))

    # VMEM budget: double-buffered streamed tiles + resident weights + f32
    # intermediates + headroom; also lifts v5e's 16 MiB default scoped limit.
    vmem_limit = int(min(100 << 20,
                         max(32 << 20,
                             2 * (w_bytes + blk * in_dim * itemsize + blk * 2 * 4)
                             + 4 * blk * Hp * 4 + (4 << 20))))

    kernel = functools.partial(_critic_kernel, hh=hh, split=split)

    out = pl.pallas_call(
        kernel,
        out_shape=jax.ShapeDtypeStruct((Bp, 2), jnp.float32),
        grid=grid,
        in_specs=[
            pl.BlockSpec((blk, in_dim), lambda i: (i, 0)),   # streamed sa tile
            resident(w1),
            resident(b12),
            resident(w2),
            resident(w3),
        ],
        out_specs=pl.BlockSpec((blk, 2), lambda i: (i, 0)),
        compiler_params=pltpu.CompilerParams(
            dimension_semantics=("parallel",),               # batch across TCs (v7x)
            vmem_limit_bytes=vmem_limit),
        cost_estimate=cost,
    )(sa, w1, b12, w2, w3)

    q = out[:B] + packed["b3"]            # fold the two output-layer scalars here
    return q[:, 0:1], q[:, 1:2]


# ----------------------------------------------------------------------------
# Param init (PyTorch nn.Linear-like, stored as (in, out)) + pure-JAX reference
# ----------------------------------------------------------------------------
def init_critic_params(key, state_dim, action_dim, hidden_width):
    in_dim = state_dim + action_dim
    dims = [
        ("w1", (in_dim, hidden_width)), ("b1", (1, hidden_width)),
        ("w2", (hidden_width, hidden_width)), ("b2", (1, hidden_width)),
        ("w3", (hidden_width, 1)), ("b3", (1, 1)),
        ("w4", (in_dim, hidden_width)), ("b4", (1, hidden_width)),
        ("w5", (hidden_width, hidden_width)), ("b5", (1, hidden_width)),
        ("w6", (hidden_width, 1)), ("b6", (1, 1)),
    ]
    params = {}
    for name, shape in dims:
        key, sub = jax.random.split(key)
        fan_in = shape[0] if name.startswith("w") else shape[1]
        bound = 1.0 / jnp.sqrt(jnp.float32(fan_in))
        params[name] = jax.random.uniform(
            sub, shape, dtype=jnp.float32, minval=-bound, maxval=bound)
    return params


def critic_forward_ref(s, a, params):
    """Pure-JAX reference matching the PyTorch module exactly."""
    sa = jnp.concatenate([s, a], axis=1)
    h = jax.nn.relu(sa @ params["w1"] + params["b1"])
    h = jax.nn.relu(h @ params["w2"] + params["b2"])
    q1 = h @ params["w3"] + params["b3"]
    g = jax.nn.relu(sa @ params["w4"] + params["b4"])
    g = jax.nn.relu(g @ params["w5"] + params["b5"])
    q2 = g @ params["w6"] + params["b6"]
    return q1, q2


if __name__ == "__main__":
    def run_case(batch, state_dim, action_dim, hidden_width, key):
        k_s, k_a, k_p = jax.random.split(key, 3)
        s = jax.random.normal(k_s, (batch, state_dim), dtype=jnp.float32)
        a = jax.random.normal(k_a, (batch, action_dim), dtype=jnp.float32)
        params = init_critic_params(k_p, state_dim, action_dim, hidden_width)
        packed = pack_critic_params(params, state_dim, action_dim, hidden_width)

        q1, q2 = critic_forward(s, a, packed)
        jax.block_until_ready((q1, q2))

        q1_ref, q2_ref = critic_forward_ref(s, a, params)
        assert q1.shape == (batch, 1) and q2.shape == (batch, 1)
        # bf16 MXU operands vs the f32 reference -> loose but meaningful tolerance.
        assert jnp.allclose(q1, q1_ref, atol=2e-2, rtol=2e-2)
        assert jnp.allclose(q2, q2_ref, atol=2e-2, rtol=2e-2)

    key = jax.random.PRNGKey(0)
    k1, k2 = jax.random.split(key)
    # Fused (block-diagonal) layer-2 path, tiny batch -> single tile.
    run_case(batch=8, state_dim=12, action_dim=4, hidden_width=32, key=k1)
    # Split layer-2 path (2*hidden > 128), multi-tile grid + batch padding.
    run_case(batch=200, state_dim=12, action_dim=4, hidden_width=160, key=k2)

    print("KERNEL_OK")
</pallas_src>

<mosaic_0001>
module attributes {stable_mosaic.version = 11 : i64} {
  func.func @_critic_kernel(%arg0: i32, %arg1: memref<8x16xbf16, #tpu.memory_space<vmem>>, %arg2: memref<16x128xbf16, #tpu.memory_space<vmem>>, %arg3: memref<2x128xf32, #tpu.memory_space<vmem>>, %arg4: memref<128x128xbf16, #tpu.memory_space<vmem>>, %arg5: memref<128x2xbf16, #tpu.memory_space<vmem>>, %arg6: memref<8x2xf32, #tpu.memory_space<vmem>>) attributes {dimension_semantics = [#tpu.dimension_semantics<parallel>], iteration_bounds = array<i64: 1>, scalar_prefetch = 0 : i64, scratch_operands = 0 : i64, tpu.core_type = #tpu.core_type<tc>, window_params = [{transform_indices = @transform_0, window_bounds = array<i64: 8, 16>}, {pipeline_mode = #tpu.pipeline_mode<synchronous>, transform_indices = @transform_1, window_bounds = array<i64: 16, 128>}, {pipeline_mode = #tpu.pipeline_mode<synchronous>, transform_indices = @transform_2, window_bounds = array<i64: 2, 128>}, {pipeline_mode = #tpu.pipeline_mode<synchronous>, transform_indices = @transform_3, window_bounds = array<i64: 128, 128>}, {pipeline_mode = #tpu.pipeline_mode<synchronous>, transform_indices = @transform_4, window_bounds = array<i64: 128, 2>}, {transform_indices = @transform_5, window_bounds = array<i64: 8, 2>}]} {
    %c0 = arith.constant 0 : index
    %c0_0 = arith.constant 0 : index
    %0 = vector.load %arg1[%c0, %c0_0] : memref<8x16xbf16, #tpu.memory_space<vmem>>, vector<8x16xbf16>
    %c0_1 = arith.constant 0 : index
    %c0_2 = arith.constant 0 : index
    %1 = vector.load %arg2[%c0_1, %c0_2] : memref<16x128xbf16, #tpu.memory_space<vmem>>, vector<16x128xbf16>
    %cst = arith.constant dense<0.000000e+00> : vector<8x128xf32>
    %2 = tpu.matmul %0, %1, %cst {dimension_numbers = #tpu.dot_dimension_numbers<[1], [0], [0], [1], [0, 0, 1, 1], [], []>} : vector<8x16xbf16>, vector<16x128xbf16>, vector<8x128xf32> -> vector<8x128xf32>
    %c0_3 = arith.constant 0 : index
    %c0_4 = arith.constant 0 : index
    %3 = vector.load %arg3[%c0_3, %c0_4] : memref<2x128xf32, #tpu.memory_space<vmem>>, vector<1x128xf32>
    %4 = vector.broadcast %3 : vector<1x128xf32> to vector<8x128xf32>
    %5 = arith.addf %2, %4 : vector<8x128xf32>
    %cst_5 = arith.constant 0.000000e+00 : f32
    %6 = vector.broadcast %cst_5 : f32 to vector<8x128xf32>
    %7 = arith.maximumf %5, %6 : vector<8x128xf32>
    %8 = arith.truncf %7 : vector<8x128xf32> to vector<8x128xbf16>
    %c0_6 = arith.constant 0 : index
    %c0_7 = arith.constant 0 : index
    %9 = vector.load %arg4[%c0_6, %c0_7] : memref<128x128xbf16, #tpu.memory_space<vmem>>, vector<128x128xbf16>
    %cst_8 = arith.constant dense<0.000000e+00> : vector<8x128xf32>
    %10 = tpu.matmul %8, %9, %cst_8 {dimension_numbers = #tpu.dot_dimension_numbers<[1], [0], [0], [1], [0, 0, 1, 1], [], []>} : vector<8x128xbf16>, vector<128x128xbf16>, vector<8x128xf32> -> vector<8x128xf32>
    %c1 = arith.constant 1 : index
    %c0_9 = arith.constant 0 : index
    %11 = vector.load %arg3[%c1, %c0_9] : memref<2x128xf32, #tpu.memory_space<vmem>>, vector<1x128xf32>
    %12 = vector.broadcast %11 : vector<1x128xf32> to vector<8x128xf32>
    %13 = arith.addf %10, %12 : vector<8x128xf32>
    %cst_10 = arith.constant 0.000000e+00 : f32
    %14 = vector.broadcast %cst_10 : f32 to vector<8x128xf32>
    %15 = arith.maximumf %13, %14 : vector<8x128xf32>
    %16 = arith.truncf %15 : vector<8x128xf32> to vector<8x128xbf16>
    %c0_11 = arith.constant 0 : index
    %c0_12 = arith.constant 0 : index
    %17 = vector.load %arg5[%c0_11, %c0_12] : memref<128x2xbf16, #tpu.memory_space<vmem>>, vector<128x2xbf16>
    %cst_13 = arith.constant dense<0.000000e+00> : vector<8x2xf32>
    %18 = tpu.matmul %16, %17, %cst_13 {dimension_numbers = #tpu.dot_dimension_numbers<[1], [0], [0], [1], [0, 0, 1, 1], [], []>} : vector<8x128xbf16>, vector<128x2xbf16>, vector<8x2xf32> -> vector<8x2xf32>
    %c0_14 = arith.constant 0 : index
    %c0_15 = arith.constant 0 : index
    %19 = vector.load %arg6[%c0_14, %c0_15] : memref<8x2xf32, #tpu.memory_space<vmem>>, vector<8x2xf32>
    tpu.vector_store %arg6[%c0_14, %c0_15], %18 {strides = array<i32>} : memref<8x2xf32, #tpu.memory_space<vmem>>, vector<8x2xf32>,
    return
  }
  func.func @transform_0(%arg0: i32) -> (i32, i32) {
    %c0_i32 = arith.constant 0 : i32
    %c0_i32_0 = arith.constant 0 : i32
    return %arg0, %c0_i32 : i32, i32
  }
  func.func @transform_1(%arg0: i32) -> (i32, i32) {
    %c0_i32 = arith.constant 0 : i32
    %c0_i32_0 = arith.constant 0 : i32
    %c0_i32_1 = arith.constant 0 : i32
    return %c0_i32, %c0_i32_0 : i32, i32
  }
  func.func @transform_2(%arg0: i32) -> (i32, i32) {
    %c0_i32 = arith.constant 0 : i32
    %c0_i32_0 = arith.constant 0 : i32
    %c0_i32_1 = arith.constant 0 : i32
    return %c0_i32, %c0_i32_0 : i32, i32
  }
  func.func @transform_3(%arg0: i32) -> (i32, i32) {
    %c0_i32 = arith.constant 0 : i32
    %c0_i32_0 = arith.constant 0 : i32
    %c0_i32_1 = arith.constant 0 : i32
    return %c0_i32, %c0_i32_0 : i32, i32
  }
  func.func @transform_4(%arg0: i32) -> (i32, i32) {
    %c0_i32 = arith.constant 0 : i32
    %c0_i32_0 = arith.constant 0 : i32
    %c0_i32_1 = arith.constant 0 : i32
    return %c0_i32, %c0_i32_0 : i32, i32
  }
  func.func @transform_5(%arg0: i32) -> (i32, i32) {
    %c0_i32 = arith.constant 0 : i32
    %c0_i32_0 = arith.constant 0 : i32
    return %arg0, %c0_i32 : i32, i32
  }
}

</mosaic_0001>

<bundles_post_ra>
// kernel: critic_forward.1
= control target key start
LH: loop header
LB: loop body
LE: loop exit
PB: predicated region body
PF: predicated region fallthrough
CT: control target
= control target key end

     0   :  { %v407_v0 = vmov 0.0   ;;  %vm408_vm0 = vmmov 0   ;;  %vm35_vm1 = vcmask 130048   ;;  %vm296_vm2 = vcmask 15360   ;;  %s522_s1 = inlined_call_operand.vmem [shape: bf16[16,128], index: 1, kind: input, shape index: {}]   ;;  %s523_s0 = inlined_call_operand.vmem [shape: bf16[8,16], index: 0, kind: input, shape index: {}]   ;;  %s524_s3 = inlined_call_operand.vmem [shape: bf16[128,128], index: 3, kind: input, shape index: {}]   ;;  %s525_s4 = inlined_call_operand.vmem [shape: bf16[128,2], index: 4, kind: input, shape index: {}]   ;;  %s526_s2 = inlined_call_operand.vmem [shape: f32[2,128], index: 2, kind: input, shape index: {}]   ;;  %s527_s5 = inlined_call_operand.vmem [shape: f32[8,2], index: 5, kind: output, shape index: {}]  }
   0x1   :  { %342 = vmatprep.subr.bf16.mxu0 %v407_v0  ;;  %v390_v1 = vld [vmem:[%s522_s1] sm:$0xff]   ;;  %344 = vmatprep.mubr.msk.bf16.mxu0 %vm408_vm0, %v407_v0  ;;  %v391_v3 = vld [vmem:[%s524_s3 + $0x38] sm:$0xff]   ;;  %v392_v4 = vld [vmem:[%s524_s3 + $0x30] sm:$0xff]  }
   0x2   :  { %v21_v2 = vld [vmem:[%s523_s0] sm:$0xf]  ;;  %348 = vmatprep.subr.bf16.mxu1 %v407_v0  ;;  %364 = vmatprep.mubr.msk.bf16.mxu1 %vm408_vm0, %v407_v0  ;;  %v393_v5 = vld [vmem:[%s524_s3 + $0x28] sm:$0xff]   ;;  %v395_v7 = vld [vmem:[%s524_s3 + $0x18] sm:$0xff]  }
   0x3   :  { %343 = vmatpush3.bf16.msra.mxu0 %v390_v1  ;;  %349 = vmatpush3.bf16.msra.mxu1 %v391_v3  ;;  %v394_v6 = vld [vmem:[%s524_s3 + $0x20] sm:$0xff]   ;;  %v396_v8 = vld [vmem:[%s524_s3 + $0x10] sm:$0xff]   ;;  %v397_v9 = vld [vmem:[%s524_s3 + $0x8] sm:$0xff]  }
   0x4   :  { %368 = vmatprep.subr.bf16.mxu0 %v407_v0  ;;  %350 = vmatprep.subr.bf16.mxu1 %v407_v0  ;;  %v398_v10 = vld [vmem:[%s524_s3] sm:$0xff]   ;;  %v399_v11 = vld [vmem:[%s525_s4 + $0x38] sm:$0xff]   ;;  %v400_v12 = vld [vmem:[%s525_s4 + $0x30] sm:$0xff]  }
   0x5   :  { %v401_v13 = vld [vmem:[%s525_s4 + $0x28] sm:$0xff]   ;;  %v402_v14 = vld [vmem:[%s525_s4 + $0x20] sm:$0xff]   ;;  %v403_v15 = vld [vmem:[%s525_s4 + $0x18] sm:$0xff]  }
   0x6   :  { %345 = vmatmul.mubr.msk.bf16.vlgmr.msra.gmra.mxu0 %vm35_vm1, %v21_v2  ;;  %v404_v16 = vld [vmem:[%s525_s4 + $0x10] sm:$0xff]   ;;  %v302_v17 = vld [vmem:[%s526_s2] ss:$0 sm:$0xff]  ;;  %v405_v25 = vld [vmem:[%s525_s4 + $0x8] sm:$0xff]  }
   0x7   :  { %384 = vmatprep.mubr.msk.bf16.mxu0 %vm408_vm0, %v407_v0  ;;  %351 = vmatpush3.bf16.msra.mxu1 %v392_v4  ;;  %v406_v26 = vld [vmem:[%s525_s4] sm:$0xff]  }
   0x8   :  { %352 = vmatprep.subr.bf16.mxu1 %v407_v0  ;;  %369 = vmatpush3.bf16.msra.mxu0 %v399_v11  ;;  %v305_v27 = vld [vmem:[%s526_s2 + $0x1] ss:$0 sm:$0xff] }
   0x9   :  { %370 = vmatprep.subr.bf16.mxu0 %v407_v0 }
   0xb   :  { %353 = vmatpush3.bf16.msra.mxu1 %v393_v5 }
   0xc   :  { %354 = vmatprep.subr.bf16.mxu1 %v407_v0  ;;  %371 = vmatpush3.bf16.msra.mxu0 %v400_v12 }
   0xd   :  { %372 = vmatprep.subr.bf16.mxu0 %v407_v0 }
   0xf   :  { %355 = vmatpush3.bf16.msra.mxu1 %v394_v6 }
  0x10   :  { %356 = vmatprep.subr.bf16.mxu1 %v407_v0  ;;  %373 = vmatpush3.bf16.msra.mxu0 %v401_v13 }
  0x11   :  { %374 = vmatprep.subr.bf16.mxu0 %v407_v0 }
  0x13   :  { %357 = vmatpush3.bf16.msra.mxu1 %v395_v7 }
  0x14   :  { %358 = vmatprep.subr.bf16.mxu1 %v407_v0  ;;  %375 = vmatpush3.bf16.msra.mxu0 %v402_v14 }
  0x15   :  { %376 = vmatprep.subr.bf16.mxu0 %v407_v0 }
  0x17   :  { %359 = vmatpush3.bf16.msra.mxu1 %v396_v8 }
  0x18   :  { %360 = vmatprep.subr.bf16.mxu1 %v407_v0  ;;  %377 = vmatpush3.bf16.msra.mxu0 %v403_v15 }
  0x19   :  { %378 = vmatprep.subr.bf16.mxu0 %v407_v0 }
  0x1b   :  { %361 = vmatpush3.bf16.msra.mxu1 %v397_v9 }
  0x1c   :  { %362 = vmatprep.subr.bf16.mxu1 %v407_v0  ;;  %379 = vmatpush3.bf16.msra.mxu0 %v404_v16 }
  0x1d   :  { %380 = vmatprep.subr.bf16.mxu0 %v407_v0 }
  0x1f   :  { %363 = vmatpush3.bf16.msra.mxu1 %v398_v10 }
  0x20   :  { %381 = vmatpush3.bf16.msra.mxu0 %v405_v25 }
  0x21   :  { %382 = vmatprep.subr.bf16.mxu0 %v407_v0 }
  0x24   :  { %383 = vmatpush3.bf16.msra.mxu0 %v406_v26 }
  0xc6   :  { %v73_v18 = vpop.f32.mrf.mxu0 }
  0xc7   :  { %v74_v19 = vadd.f32 %v302_v17, %v73_v18 }
  0xc8   :  { %v346_v20 = vpop.f32.mrf.mxu0 }
  0xc9   :  { %v79_v21 = vmax.f32 %v74_v19, 0.0 }
  0xca   :  { %v76_v22 = vpop.f32.mrf.mxu0 }
  0xcb   :  { %v80_v23 = vpack.c.bf16 %v79_v21, %v79_v21 }
  0xcc   :  { %v347_v24 = vpop.f32.mrf.mxu0 }
  0xcd   :  { %365 = vmatmul.mubr.bf16.vlgmr.msra.gmra.mxu1 %v80_v23 }
 0x18d   :  { %v184_v28 = vpop.f32.mrf.mxu1 }
 0x18e   :  { %v185_v29 = vadd.f32 %v305_v27, %v184_v28 }
 0x18f   :  { %v366_v30 = vpop.f32.mrf.mxu1 }
 0x190   :  { %v190_v31 = vmax.f32 %v185_v29, 0.0 }
 0x191   :  { %v187_v32 = vpop.f32.mrf.mxu1 }
 0x192   :  { %v191_v33 = vpack.c.bf16 %v190_v31, %v190_v31 }
 0x193   :  { %v367_v34 = vpop.f32.mrf.mxu1 }
 0x194   :  { %385 = vmatmul.mubr.bf16.vlgmr.msra.gmra.mxu0 %v191_v33 }
 0x254   :  { %v290_v35 = vpop.f32.mrf.mxu0 }
 0x255   :  { %297 = vst.msk [vmem:[%s527_s5] sm:$0xff] %vm296_vm2, %v290_v35 }
 0x256   :  { %v386_v36 = vpop.f32.mrf.mxu0 }
 0x258   :  { %v293_v37 = vpop.f32.mrf.mxu0 }
 0x25a   :  { %v387_v38 = vpop.f32.mrf.mxu0 }

</bundles_post_ra>
